<compile_context>
chip_gen: v6e
topology: v6e:2x2x1
jax: 0.10.0
libtpu: 0.0.40
codegen_flags: <defaults>
</compile_context>

<pallas_src>
import functools

import jax
import jax.numpy as jnp
from jax.experimental import pallas as pl
from jax.experimental.pallas import tpu as pltpu

_LANES = 128
_ACC_ROWS = 32                         # accumulator sublanes (4 independent vreg chains)
_TARGET_BLOCK_ROWS = 8192              # f32: 8192*128*4B = 4 MiB per input per block
_VMEM_LIMIT_BYTES = 40 * 1024 * 1024   # > v5e 16 MiB default, < v7x 64 MiB physical


def _round_up(x: int, m: int) -> int:
    return ((x + m - 1) // m) * m


def _l1_sum_kernel(sr_ref, hr_ref, out_ref, acc_ref, *,
                   block_rows, total_rows, blocks_per_chunk, n_blocks,
                   need_row_mask):
    c = pl.program_id(0)   # chunk axis ("parallel"; megacore-shardable)
    k = pl.program_id(1)   # sequential reduction axis within a chunk

    @pl.when(k == 0)
    def _():
        acc_ref[...] = jnp.zeros_like(acc_ref)

    d = jnp.abs(sr_ref[...].astype(jnp.float32) - hr_ref[...].astype(jnp.float32))

    def _fold_into_acc(x):
        # Lane/sublane-parallel accumulation only: a layout-preserving reshape
        # then vadds into 4 independent (8,128)-vreg chains; the cross-lane
        # reduce never happens inside the streaming loop.
        acc_ref[...] += x.reshape(-1, _ACC_ROWS, _LANES).sum(axis=0)

    if need_row_mask:
        blk = c * blocks_per_chunk + k
        is_boundary = blk == (n_blocks - 1)

        # Steady state: interior blocks accumulate with zero masking work.
        @pl.when(jnp.logical_not(is_boundary))
        def _():
            _fold_into_acc(d)

        # Boundary block only: zero rows past the true extent.  jnp.where
        # (select) blocks NaN propagation from the unspecified padded rows;
        # the (block_rows, 1) iota keeps mask temporaries tiny.
        @pl.when(is_boundary)
        def _():
            valid = total_rows - blk * block_rows
            row_ids = jax.lax.broadcasted_iota(jnp.int32, (block_rows, 1), 0)
            _fold_into_acc(jnp.where(row_ids < valid, d, 0.0))
    else:
        _fold_into_acc(d)

    @pl.when(k == pl.num_programs(1) - 1)
    def _():
        out_ref[0] = acc_ref[...]   # lane-dense (32,128) partial per chunk


def l1_loss(sr: jax.Array, hr: jax.Array, *,
            block_rows_target: int = _TARGET_BLOCK_ROWS) -> jax.Array:
    """Mean absolute error over all elements, computed in a Pallas TPU kernel."""
    assert sr.shape == hr.shape, "SR and HR must have identical shapes"
    n = sr.size
    if n == 0:
        return jnp.float32(0.0)

    itemsize = jnp.dtype(sr.dtype).itemsize

    sr_flat = sr.reshape(-1)
    hr_flat = hr.reshape(-1)

    # Ragged (<128-element) tail handled in tiny plain JAX -- no whole-tensor pad.
    tail = n % _LANES
    main = n - tail
    tail_sum = jnp.float32(0.0)
    if tail:
        tail_sum = jnp.sum(
            jnp.abs(sr_flat[main:].astype(jnp.float32)
                    - hr_flat[main:].astype(jnp.float32)))
    if main == 0:  # degenerate: fewer than 128 elements total
        return (tail_sum / jnp.float32(n)).astype(jnp.float32)

    rows = main // _LANES
    # Zero-copy reshape when n is lane-aligned (the common case); for ragged
    # sizes only the aligned prefix is materialized (cheaper than pad of both).
    sr2d = sr_flat[:main].reshape(rows, _LANES)
    hr2d = hr_flat[:main].reshape(rows, _LANES)

    # Block size: as large as VMEM comfortably allows, multiple of the
    # accumulator width (32 sublanes covers f32/bf16/int8 packing).
    block_rows = min(_round_up(block_rows_target, _ACC_ROWS),
                     _round_up(rows, _ACC_ROWS))
    n_blocks = pl.cdiv(rows, block_rows)

    # Megacore chunk axis only when it splits evenly (no overhang DMA).
    # TODO(synk): switch to pltpu.CORE_PARALLEL if a v7x trace shows a single core.
    n_chunks = 2 if (n_blocks >= 2 and n_blocks % 2 == 0) else 1
    blocks_per_chunk = n_blocks // n_chunks

    need_row_mask = (rows % block_rows) != 0

    kernel = functools.partial(
        _l1_sum_kernel,
        block_rows=block_rows,
        total_rows=rows,
        blocks_per_chunk=blocks_per_chunk,
        n_blocks=n_blocks,
        need_row_mask=need_row_mask,
    )

    def _in_map(c, k):
        return (c * blocks_per_chunk + k, 0)

    cost = pl.CostEstimate(
        flops=3 * n,                                    # sub + abs + add
        transcendentals=0,
        bytes_accessed=2 * main * itemsize + n_chunks * _ACC_ROWS * _LANES * 4,
    )

    partials = pl.pallas_call(
        kernel,
        out_shape=jax.ShapeDtypeStruct((n_chunks, _ACC_ROWS, _LANES), jnp.float32),
        grid_spec=pltpu.PrefetchScalarGridSpec(
            num_scalar_prefetch=0,
            grid=(n_chunks, blocks_per_chunk),
            in_specs=[
                pl.BlockSpec((block_rows, _LANES), _in_map),
                pl.BlockSpec((block_rows, _LANES), _in_map),
            ],
            out_specs=pl.BlockSpec((1, _ACC_ROWS, _LANES), lambda c, k: (c, 0, 0)),
            scratch_shapes=[pltpu.VMEM((_ACC_ROWS, _LANES), jnp.float32)],
        ),
        compiler_params=pltpu.CompilerParams(
            dimension_semantics=("parallel", "arbitrary"),
            vmem_limit_bytes=_VMEM_LIMIT_BYTES,
        ),
        cost_estimate=cost,
    )(sr2d, hr2d)

    total = jnp.sum(partials) + tail_sum
    return (total / jnp.float32(n)).astype(jnp.float32)


if __name__ == "__main__":
    # 1) Small aligned NCHW SR/HR pair (single block, no masking).
    k_sr, k_hr = jax.random.split(jax.random.PRNGKey(0))
    sr = jax.random.normal(k_sr, (2, 4, 16, 16), dtype=jnp.float32)
    hr = jax.random.normal(k_hr, (2, 4, 16, 16), dtype=jnp.float32)
    loss = l1_loss(sr, hr)
    jax.block_until_ready(loss)
    ref = jnp.mean(jnp.abs(sr - hr))
    assert jnp.allclose(loss, ref, rtol=1e-5, atol=1e-6), (loss, ref)

    # 2) Non-lane-aligned total size: exercises the plain-JAX ragged tail
    #    plus the boundary-row mask inside the kernel.
    k_sr2, k_hr2 = jax.random.split(jax.random.PRNGKey(1))
    sr2 = jax.random.normal(k_sr2, (2, 3, 17, 19), dtype=jnp.float32)
    hr2 = jax.random.normal(k_hr2, (2, 3, 17, 19), dtype=jnp.float32)
    loss2 = l1_loss(sr2, hr2)
    jax.block_until_ready(loss2)
    ref2 = jnp.mean(jnp.abs(sr2 - hr2))
    assert jnp.allclose(loss2, ref2, rtol=1e-5, atol=1e-6), (loss2, ref2)

    # 3) Multi-block + 2-chunk grid + partial boundary block (small block
    #    target so the test tensors stay small: 2560 rows -> 8 blocks of 352).
    k_sr3, k_hr3 = jax.random.split(jax.random.PRNGKey(2))
    sr3 = jax.random.normal(k_sr3, (2, 8, 160, 128), dtype=jnp.float32)
    hr3 = jax.random.normal(k_hr3, (2, 8, 160, 128), dtype=jnp.float32)
    loss3 = l1_loss(sr3, hr3, block_rows_target=352)
    jax.block_until_ready(loss3)
    ref3 = jnp.mean(jnp.abs(sr3 - hr3))
    assert jnp.allclose(loss3, ref3, rtol=1e-5, atol=1e-6), (loss3, ref3)

    # 4) Same data through the default large-block path (single big block).
    loss4 = l1_loss(sr3, hr3)
    jax.block_until_ready(loss4)
    assert jnp.allclose(loss4, ref3, rtol=1e-5, atol=1e-6), (loss4, ref3)

    print("KERNEL_OK")
</pallas_src>

<mosaic_0001>
module attributes {stable_mosaic.version = 11 : i64} {
  func.func @_l1_sum_kernel(%arg0: i32, %arg1: i32, %arg2: memref<32x128xf32, #tpu.memory_space<vmem>>, %arg3: memref<32x128xf32, #tpu.memory_space<vmem>>, %arg4: memref<1x32x128xf32, #tpu.memory_space<vmem>>, %arg5: memref<32x128xf32, #tpu.memory_space<vmem>>) attributes {dimension_semantics = [#tpu.dimension_semantics<parallel>, #tpu.dimension_semantics<arbitrary>], iteration_bounds = array<i64: 1, 1>, scalar_prefetch = 0 : i64, scratch_operands = 1 : i64, tpu.core_type = #tpu.core_type<tc>, window_params = [{transform_indices = @transform_0, window_bounds = array<i64: 32, 128>}, {transform_indices = @transform_1, window_bounds = array<i64: 32, 128>}, {transform_indices = @transform_2, window_bounds = array<i64: 1, 32, 128>}]} {
    %c0_i32 = arith.constant 0 : i32
    %0 = arith.cmpi eq, %arg1, %c0_i32 : i32
    %1 = arith.extui %0 : i1 to i32
    %c0_i32_0 = arith.constant 0 : i32
    %2 = arith.cmpi ne, %1, %c0_i32_0 : i32
    scf.if %2 {
      %cst = arith.constant 0.000000e+00 : f32
      %18 = vector.broadcast %cst : f32 to vector<32x128xf32>
      %c0_9 = arith.constant 0 : index
      %c0_10 = arith.constant 0 : index
      %19 = vector.load %arg5[%c0_9, %c0_10] : memref<32x128xf32, #tpu.memory_space<vmem>>, vector<32x128xf32>
      tpu.vector_store %arg5[%c0_9, %c0_10], %18 {strides = array<i32>} : memref<32x128xf32, #tpu.memory_space<vmem>>, vector<32x128xf32>,
    } else {
    }
    %c0 = arith.constant 0 : index
    %c0_1 = arith.constant 0 : index
    %3 = vector.load %arg2[%c0, %c0_1] : memref<32x128xf32, #tpu.memory_space<vmem>>, vector<32x128xf32>
    %c0_2 = arith.constant 0 : index
    %c0_3 = arith.constant 0 : index
    %4 = vector.load %arg3[%c0_2, %c0_3] : memref<32x128xf32, #tpu.memory_space<vmem>>, vector<32x128xf32>
    %5 = arith.subf %3, %4 : vector<32x128xf32>
    %6 = math.absf %5 : vector<32x128xf32>
    %c1_i32 = arith.constant 1 : i32
    %7 = arith.muli %arg0, %c1_i32 : i32
    %8 = arith.addi %7, %arg1 : i32
    %c0_i32_4 = arith.constant 0 : i32
    %9 = arith.cmpi eq, %8, %c0_i32_4 : i32
    %true = arith.constant true
    %10 = arith.xori %9, %true : i1
    %11 = arith.extui %10 : i1 to i32
    %c0_i32_5 = arith.constant 0 : i32
    %12 = arith.cmpi ne, %11, %c0_i32_5 : i32
    scf.if %12 {
      %c0_9 = arith.constant 0 : index
      %c0_10 = arith.constant 0 : index
      %18 = vector.load %arg5[%c0_9, %c0_10] : memref<32x128xf32, #tpu.memory_space<vmem>>, vector<32x128xf32>
      %19 = vector.shape_cast %6 : vector<32x128xf32> to vector<1x32x128xf32>
      %cst = arith.constant dense<0.000000e+00> : vector<32x128xf32>
      %20 = vector.multi_reduction <add>, %19, %cst [0] : vector<1x32x128xf32> to vector<32x128xf32>
      %21 = arith.addf %18, %20 : vector<32x128xf32>
      %c0_11 = arith.constant 0 : index
      %c0_12 = arith.constant 0 : index
      %22 = vector.load %arg5[%c0_11, %c0_12] : memref<32x128xf32, #tpu.memory_space<vmem>>, vector<32x128xf32>
      tpu.vector_store %arg5[%c0_11, %c0_12], %21 {strides = array<i32>} : memref<32x128xf32, #tpu.memory_space<vmem>>, vector<32x128xf32>,
    } else {
    }
    %13 = arith.extui %9 : i1 to i32
    %c0_i32_6 = arith.constant 0 : i32
    %14 = arith.cmpi ne, %13, %c0_i32_6 : i32
    scf.if %14 {
      %c32_i32 = arith.constant 32 : i32
      %18 = arith.muli %8, %c32_i32 : i32
      %c16_i32 = arith.constant 16 : i32
      %19 = arith.subi %c16_i32, %18 : i32
      %20 = tpu.iota {dimensions = array<i32: 0>} : vector<32x1xi32>
      %21 = vector.broadcast %19 : i32 to vector<32x1xi32>
      %22 = arith.cmpi slt, %20, %21 : vector<32x1xi32>
      %cst = arith.constant 0.000000e+00 : f32
      %23 = vector.shape_cast %22 : vector<32x1xi1> to vector<32x1xi1>
      %24 = vector.broadcast %23 : vector<32x1xi1> to vector<32x128xi1>
      %25 = vector.broadcast %cst : f32 to vector<32x128xf32>
      %26 = arith.select %24, %6, %25 : vector<32x128xi1>, vector<32x128xf32>
      %c0_9 = arith.constant 0 : index
      %c0_10 = arith.constant 0 : index
      %27 = vector.load %arg5[%c0_9, %c0_10] : memref<32x128xf32, #tpu.memory_space<vmem>>, vector<32x128xf32>
      %28 = vector.shape_cast %26 : vector<32x128xf32> to vector<1x32x128xf32>
      %cst_11 = arith.constant dense<0.000000e+00> : vector<32x128xf32>
      %29 = vector.multi_reduction <add>, %28, %cst_11 [0] : vector<1x32x128xf32> to vector<32x128xf32>
      %30 = arith.addf %27, %29 : vector<32x128xf32>
      %c0_12 = arith.constant 0 : index
      %c0_13 = arith.constant 0 : index
      %31 = vector.load %arg5[%c0_12, %c0_13] : memref<32x128xf32, #tpu.memory_space<vmem>>, vector<32x128xf32>
      tpu.vector_store %arg5[%c0_12, %c0_13], %30 {strides = array<i32>} : memref<32x128xf32, #tpu.memory_space<vmem>>, vector<32x128xf32>,
    } else {
    }
    %c0_i32_7 = arith.constant 0 : i32
    %15 = arith.cmpi eq, %arg1, %c0_i32_7 : i32
    %16 = arith.extui %15 : i1 to i32
    %c0_i32_8 = arith.constant 0 : i32
    %17 = arith.cmpi ne, %16, %c0_i32_8 : i32
    scf.if %17 {
      %c0_9 = arith.constant 0 : index
      %c0_10 = arith.constant 0 : index
      %18 = vector.load %arg5[%c0_9, %c0_10] : memref<32x128xf32, #tpu.memory_space<vmem>>, vector<32x128xf32>
      %c0_11 = arith.constant 0 : index
      %c0_12 = arith.constant 0 : index
      %c0_13 = arith.constant 0 : index
      %19 = vector.load %arg4[%c0_11, %c0_12, %c0_13] : memref<1x32x128xf32, #tpu.memory_space<vmem>>, vector<1x32x128xf32>
      %20 = vector.shape_cast %19 : vector<1x32x128xf32> to vector<32x128xf32>
      %21 = vector.shape_cast %18 : vector<32x128xf32> to vector<1x32x128xf32>
      tpu.vector_store %arg4[%c0_11, %c0_12, %c0_13], %21 {strides = array<i32>} : memref<1x32x128xf32, #tpu.memory_space<vmem>>, vector<1x32x128xf32>,
    } else {
    }
    return
  }
  func.func @transform_0(%arg0: i32, %arg1: i32) -> (i32, i32) {
    %c1_i32 = arith.constant 1 : i32
    %0 = arith.muli %arg0, %c1_i32 : i32
    %1 = arith.addi %0, %arg1 : i32
    %c0_i32 = arith.constant 0 : i32
    %c0_i32_0 = arith.constant 0 : i32
    return %1, %c0_i32 : i32, i32
  }
  func.func @transform_1(%arg0: i32, %arg1: i32) -> (i32, i32) {
    %c1_i32 = arith.constant 1 : i32
    %0 = arith.muli %arg0, %c1_i32 : i32
    %1 = arith.addi %0, %arg1 : i32
    %c0_i32 = arith.constant 0 : i32
    %c0_i32_0 = arith.constant 0 : i32
    return %1, %c0_i32 : i32, i32
  }
  func.func @transform_2(%arg0: i32, %arg1: i32) -> (i32, i32, i32) {
    %c0_i32 = arith.constant 0 : i32
    %c0_i32_0 = arith.constant 0 : i32
    %c0_i32_1 = arith.constant 0 : i32
    return %arg0, %c0_i32, %c0_i32_0 : i32, i32, i32
  }
}

</mosaic_0001>

<bundles_post_ra>
// kernel: tpu_custom_call.1
= control target key start
LH: loop header
LB: loop body
LE: loop exit
PB: predicated region body
PF: predicated region fallthrough
CT: control target
= control target key end

     0   :  { %7 = vsyncpa [#allocation4], 0  ;;  %s293_s0 = inlined_call_operand.hbm [shape: f32[16,128], index: 0, kind: input, shape index: {}]   ;;  %s294_s1 = inlined_call_operand.hbm [shape: f32[16,128], index: 1, kind: input, shape index: {}]   ;;  %s295_s2 = inlined_call_operand.hbm [shape: f32[1,32,128], index: 2, kind: output, shape index: {}]  }
   0x1   :  { %8 = vsyncpa [#allocation7], 0 }
   0x2   :  { %9 = vsyncpa [#allocation5], 0 }
   0x3   :  { %18 = vsyncadd [#allocation4], 256  ;;  %s254_s9 = smov [#allocation3]  }
   0x4   :  { %s23_s10 = sshll.u32 %s254_s9, 4  ;;  %s24_s10 = int_to_ptr.vmem [resolvable:$true] %s23_s10 }
   0x5   :  { %s196_s11 = scalar_lea.vmem %s24_s10, 256  ;;  %s200_s12 = scalar_lea.vmem %s24_s10, 512 }
   0x6   :  { %p197_p0 = scmp.ne.s32.totalorder %s24_s10, %s196_s11  ;;  %p201_p1 = scmp.lt.s32.totalorder %s24_s10, %s24_s10 }
   0x7   :  { %p202_p2 = scmp.lt.s32.totalorder %s200_s12, %s196_s11 }
   0x9   :  { %p203_p3 = por %p202_p2, %p201_p1 }
   0xb   :  { %p204_p4 = pnand %p203_p3, %p197_p0 }
   0xd   :  { %207 = shalt.err (!%p204_p4)
}
   0xe   :  { %s255_s13 = smov 128   ;;  %s256_s14 = smov 8  }
   0xf   :  { %29 = dma.hbm_to_vmem [thread:$0]  %s293_s0, 256, %s24_s10, [#allocation4], %s255_s13, %s255_s13, %s256_s14  }
  0x10   :  { %38 = vsyncadd [#allocation7], 256  ;;  %s257_s17 = smov [#allocation6]  }
  0x11   :  { %s43_s18 = sshll.u32 %s257_s17, 4  ;;  %s44_s18 = int_to_ptr.vmem [resolvable:$true] %s43_s18 }
  0x12   :  { %s216_s19 = scalar_lea.vmem %s44_s18, 256  ;;  %s220_s20 = scalar_lea.vmem %s44_s18, 512 }
  0x13   :  { %p217_p5 = scmp.ne.s32.totalorder %s44_s18, %s216_s19  ;;  %p221_p6 = scmp.lt.s32.totalorder %s44_s18, %s44_s18 }
  0x14   :  { %p222_p7 = scmp.lt.s32.totalorder %s220_s20, %s216_s19 }
  0x16   :  { %p223_p8 = por %p222_p7, %p221_p6 }
  0x18   :  { %p224_p9 = pnand %p223_p8, %p217_p5 }
  0x1a   :  { %227 = shalt.err (!%p224_p9)
}
  0x1b   :  { %49 = dma.hbm_to_vmem [thread:$0]  %s294_s1, 256, %s44_s18, [#allocation7], %s255_s13, %s255_s13, %s256_s14  }
  0x1c   :  { %248 = dma.done.wait [#allocation4], 512  }
  0x1d   :  { %249 = vsyncadd [#allocation4], 4294966784 }
  0x1e   :  { %250 = dma.done.wait [#allocation7], 512  }
  0x1f   :  { %251 = vsyncadd [#allocation7], 4294966784  ;;  %v258_v0 = vmov 0.0   ;;  %v72_v1 = vld [vmem:[#allocation3] sm:$0xff]  ;;  %v73_v3 = vld [vmem:[#allocation3 + $0x8] sm:$0xff]  ;;  %s259_s0 = smov [#allocation8]  }
  0x20   :  { %162 = vst [vmem:[#allocation8 + $0x10] sm:$0xff] %v258_v0  ;;  %163 = vst [vmem:[#allocation8 + $0x18] sm:$0xff] %v258_v0  ;;  %v76_v2 = vld [vmem:[#allocation6] sm:$0xff]  ;;  %v77_v5 = vld [vmem:[#allocation6 + $0x8] sm:$0xff]  ;;  %s169_s23 = sshll.u32 %s259_s0, 4  ;;  %s170_s23 = int_to_ptr.vmem [resolvable:$true] %s169_s23 }
  0x21   :  { %v80_v4 = vsub.f32 %v72_v1, %v76_v2  ;;  %v81_v6 = vsub.f32 %v73_v3, %v77_v5  ;;  %s228_s1 = scalar_lea.vmem %s170_s23, 512  ;;  %p233_p11 = scmp.lt.s32.totalorder %s170_s23, %s170_s23 }
  0x22   :  { %p229_p10 = scmp.ne.s32.totalorder %s170_s23, %s228_s1  ;;  %p234_p12 = scmp.lt.s32.totalorder %s228_s1, %s228_s1 }
  0x23   :  { %v84_v7 = vand.u32 2147483647, %v80_v4  ;;  %v85_v8 = vand.u32 2147483647, %v81_v6 }
  0x24   :  { %p235_p13 = por %p234_p12, %p233_p11 }
  0x25   :  { %160 = vst [vmem:[#allocation8] sm:$0xff] %v84_v7  ;;  %161 = vst [vmem:[#allocation8 + $0x8] sm:$0xff] %v85_v8 }
  0x26   :  { %p236_p0 = pnand %p235_p13, %p229_p10 }
  0x28   :  { %239 = shalt.err (!%p236_p0)
}
  0x29   :  { %175 = dma.vmem_to_hbm [thread:$0]  %s170_s23, 512, %s295_s2, [#allocation5], %s255_s13, %s255_s13, %s256_s14  }
  0x2a   :  { %252 = dma.done.wait [#allocation5], 512  }
  0x2b   :  { %253 = vsyncadd [#allocation5], 4294966784 }
  0x2c   :  { %179 = vsyncpa [#allocation4], 1 }
  0x2d   :  { %180 = vsyncpa [#allocation7], 1 }
  0x2e   :  { %181 = vsyncpa [#allocation5], 1 }

</bundles_post_ra>
